<compile_context>
chip_gen: v5e
topology: v5e:2x2
jax: 0.10.0
libtpu: 0.0.40
codegen_flags: <defaults>
</compile_context>

<pallas_src>
import jax
import jax.numpy as jnp
from jax.experimental import pallas as pl
from jax.experimental.pallas import tpu as pltpu


def fourier_unit_kernel(slope_ref, act_ref, w3_ref, w1_ref, out_ref):
    # slope_ref: (1,)               f32 SMEM  combined PReLU slope
    # act_ref:   (1, 9*Cin2, N)     bf16      tap-stacked spectral activations
    # w3_ref:    (Cout2, 9*Cin2)    bf16      3x3 conv weight, (cin, tap)-flat
    # w1_ref:    (Cout2, 2*Cout2+8) f32       1x1 weight | bias col | zero pad
    # out_ref:   (1, Cout2, N)      f32       lane-dense channels-first output
    lanes = act_ref.shape[-1]

    # conv_layer_vis (3x3, pad=1, bias=False): one MXU matmul, K = 9*Cin2,
    # f32 accumulation.
    acc = jnp.dot(w3_ref[...], act_ref[0], preferred_element_type=jnp.float32)

    # Reference applies Prelu2(Prelu1(conv_vis)) (and overwrites the ir branch
    # with it — reproduced bug-for-bug); collapsed to a single select.
    s = slope_ref[0]
    p2 = jnp.where(acc >= 0, acc, s * acc)

    # 1x1 conv on cat([conv_vis, prelu]) + bias, fused into one f32 dot.
    # The ones block carries the bias (w1_ref columns 2*Cout2.. = [b1 | 0s]);
    # 8 ones rows keep the sublane concat tile-aligned.
    ones = jnp.ones((8, lanes), jnp.float32)
    cat = jnp.concatenate([acc, p2, ones], axis=0)          # (2*Cout2+8, N)
    y = jnp.dot(w1_ref[...], cat, preferred_element_type=jnp.float32)
    out_ref[0] = y.astype(out_ref.dtype)


def _num_grid_steps(batch):
    # v7x has 2 TensorCores/chip: keep a 2-way "parallel" split there.
    # v5e/v6e are single-TC: per-grid-step overhead (~0.35 us) dominates this
    # tiny kernel, so fold everything into one step.
    try:
        kind = jax.devices()[0].device_kind.lower()
    except Exception:
        kind = ""
    if "v7" in kind and batch % 2 == 0:
        return 2
    return 1


def spectral_transform_forward(vis, ir, params):
    del ir  # ir never influences the output in the reference forward pass
    B, C, H, W = vis.shape
    wv = params["w_vis"]                       # (Cout2, Cin2, 3, 3)
    w1 = params["w_1x1"][:, :, 0, 0]           # (Cout2, 2*Cout2)
    b1 = params["b_1x1"]                       # (Cout2,)
    a1 = jnp.asarray(params["prelu1"], jnp.float32)
    a2 = jnp.asarray(params["prelu2"], jnp.float32)
    Cout2, Cin2 = wv.shape[0], wv.shape[1]

    # ---- glue: rfft2 (ortho) + real/imag channel packing ----
    # TODO(synk): rfft2/irfft2 have no Pallas primitive; FFTs stay in plain JAX.
    ffted = jnp.fft.rfft2(vis, norm="ortho")                  # (B, C, H, Wf) c64
    Wf = ffted.shape[-1]
    x = jnp.stack([ffted.real, ffted.imag], axis=2)
    x = x.reshape(B, Cin2, H, Wf).astype(jnp.bfloat16)

    # im2col-lite: single spatial pad, 9 shifted tap views stacked on the
    # contraction axis (ordering matches wv.reshape(Cout2, Cin2*9)); flattened
    # spatial is lane-padded to a multiple of 128 for unmasked stores.
    xp = jnp.pad(x, ((0, 0), (0, 0), (1, 1), (1, 1)))
    taps = [xp[:, :, ky:ky + H, kx:kx + Wf]
            for ky in range(3) for kx in range(3)]
    act = jnp.stack(taps, axis=2).reshape(B, Cin2 * 9, H * Wf)
    n_sp = H * Wf
    n_lane = ((n_sp + 127) // 128) * 128
    act = jnp.pad(act, ((0, 0), (0, 0), (0, n_lane - n_sp)))

    # Fold the batch onto the lane axis; one grid step per TensorCore's work.
    n_steps = _num_grid_steps(B)
    Bl = B // n_steps
    lanes = Bl * n_lane
    act = act.reshape(n_steps, Bl, Cin2 * 9, n_lane)
    act = jnp.transpose(act, (0, 2, 1, 3)).reshape(n_steps, Cin2 * 9, lanes)

    # Weight re-layouts: 3x3 flattened tap-minor; 1x1 augmented with the bias
    # column + zero pad so the bias rides the same fused dot.
    w3 = wv.reshape(Cout2, Cin2 * 9).astype(jnp.bfloat16)
    w1_aug = jnp.concatenate(
        [w1, b1[:, None], jnp.zeros((Cout2, 7), w1.dtype)],
        axis=1).astype(jnp.float32)                           # (Cout2, 2*Cout2+8)

    # Combined PReLU slope: Prelu2(Prelu1(x)) == where(x >= 0, x, slope * x).
    slope = jnp.where(a1 >= 0, a1 * a2, a1).reshape(1)

    out = pl.pallas_call(
        fourier_unit_kernel,
        out_shape=jax.ShapeDtypeStruct((n_steps, Cout2, lanes), jnp.float32),
        grid_spec=pltpu.PrefetchScalarGridSpec(
            num_scalar_prefetch=0,
            grid=(n_steps,),
            in_specs=[
                pl.BlockSpec(memory_space=pltpu.MemorySpace.SMEM),        # slope
                pl.BlockSpec((1, Cin2 * 9, lanes), lambda i: (i, 0, 0)),  # act
                pl.BlockSpec((Cout2, Cin2 * 9), lambda i: (0, 0)),        # 3x3 w
                pl.BlockSpec((Cout2, 2 * Cout2 + 8), lambda i: (0, 0)),   # 1x1 w
            ],
            out_specs=pl.BlockSpec((1, Cout2, lanes), lambda i: (i, 0, 0)),
        ),
        compiler_params=pltpu.CompilerParams(
            dimension_semantics=("parallel",)),
    )(slope, act, w3, w1_aug)

    # ---- glue: unfold batch, drop lane pad, repack to complex, inverse rfft ----
    y = out.reshape(n_steps, Cout2, Bl, n_lane).transpose(0, 2, 1, 3)
    y = y.reshape(B, Cout2, n_lane)[:, :, :n_sp].reshape(B, Cout2, H, Wf)
    y = y.reshape(B, Cout2 // 2, 2, H, Wf)
    comp = jax.lax.complex(y[:, :, 0], y[:, :, 1])
    return jnp.fft.irfft2(comp, s=(H, W), norm="ortho")       # (B, out_ch, H, W)


def reference_forward(vis, ir, params):
    """Pure-JAX reference mirroring the PyTorch FourierUnit forward."""
    del ir
    wv = params["w_vis"]
    w1 = params["w_1x1"]
    b1 = params["b_1x1"]
    a1, a2 = params["prelu1"], params["prelu2"]
    B, C, H, W = vis.shape
    ffted = jnp.fft.rfft2(vis, norm="ortho")
    Wf = ffted.shape[-1]
    x = jnp.stack([ffted.real, ffted.imag], axis=2).reshape(B, 2 * C, H, Wf)
    dn = ("NCHW", "OIHW", "NCHW")
    conv_vis = jax.lax.conv_general_dilated(x, wv, (1, 1), ((1, 1), (1, 1)),
                                            dimension_numbers=dn)
    p1 = jnp.where(conv_vis >= 0, conv_vis, a1 * conv_vis)
    p2 = jnp.where(p1 >= 0, p1, a2 * p1)
    cat = jnp.concatenate([conv_vis, p2], axis=1)
    y = jax.lax.conv_general_dilated(cat, w1, (1, 1), ((0, 0), (0, 0)),
                                     dimension_numbers=dn)
    y = y + b1.reshape(1, -1, 1, 1)
    Cout2 = y.shape[1]
    y = y.reshape(B, Cout2 // 2, 2, H, Wf)
    comp = jax.lax.complex(y[:, :, 0], y[:, :, 1])
    return jnp.fft.irfft2(comp, s=(H, W), norm="ortho")


if __name__ == "__main__":
    key = jax.random.PRNGKey(0)
    k_vis, k_ir, k_wv, k_w1, k_b1 = jax.random.split(key, 5)

    # Module constraint: cat gives 4*out channels feeding Conv(in*4, ...), so in == out.
    B, C, H, W = 2, 4, 16, 16
    in_ch = out_ch = C
    Cin2, Cout2 = 2 * in_ch, 2 * out_ch

    vis = jax.random.normal(k_vis, (B, C, H, W), jnp.float32)
    ir = jax.random.normal(k_ir, (B, C, H, W), jnp.float32)

    params = {
        "w_vis": 0.1 * jax.random.normal(k_wv, (Cout2, Cin2, 3, 3), jnp.float32),
        # TODO(synk): conv_layer_ir weights are dead code in the reference forward
        # (its output is immediately overwritten by Prelu1(ffted_vis)), so omitted.
        "w_1x1": 0.1 * jax.random.normal(k_w1, (Cout2, 2 * Cout2, 1, 1), jnp.float32),
        "b_1x1": 0.1 * jax.random.normal(k_b1, (Cout2,), jnp.float32),
        "prelu1": 0.25,  # nn.PReLU() default init
        "prelu2": 0.25,
    }

    out = jax.block_until_ready(spectral_transform_forward(vis, ir, params))
    ref = jax.block_until_ready(reference_forward(vis, ir, params))

    assert out.shape == (B, out_ch, H, W), out.shape
    assert bool(jnp.all(jnp.isfinite(out)))
    max_err = float(jnp.max(jnp.abs(out - ref)))
    assert max_err < 5e-2, f"max abs err {max_err}"
    print("KERNEL_OK")
</pallas_src>

<mosaic_0001>
module attributes {stable_mosaic.version = 11 : i64} {
  func.func @fourier_unit_kernel(%arg0: i32, %arg1: memref<1xf32, #tpu.memory_space<smem>>, %arg2: memref<1x72x512xbf16, #tpu.memory_space<vmem>>, %arg3: memref<8x72xbf16, #tpu.memory_space<vmem>>, %arg4: memref<8x24xf32, #tpu.memory_space<vmem>>, %arg5: memref<1x8x512xf32, #tpu.memory_space<vmem>>) attributes {dimension_semantics = [#tpu.dimension_semantics<parallel>], iteration_bounds = array<i64: 1>, scalar_prefetch = 0 : i64, scratch_operands = 0 : i64, tpu.core_type = #tpu.core_type<tc>, window_params = [{transform_indices = @transform_0, window_bounds = array<i64: 1>}, {transform_indices = @transform_1, window_bounds = array<i64: 1, 72, 512>}, {pipeline_mode = #tpu.pipeline_mode<synchronous>, transform_indices = @transform_2, window_bounds = array<i64: 8, 72>}, {pipeline_mode = #tpu.pipeline_mode<synchronous>, transform_indices = @transform_3, window_bounds = array<i64: 8, 24>}, {transform_indices = @transform_4, window_bounds = array<i64: 1, 8, 512>}]} {
    %c0 = arith.constant 0 : index
    %c0_0 = arith.constant 0 : index
    %0 = vector.load %arg3[%c0, %c0_0] : memref<8x72xbf16, #tpu.memory_space<vmem>>, vector<8x72xbf16>
    %c0_1 = arith.constant 0 : index
    %c0_2 = arith.constant 0 : index
    %c0_3 = arith.constant 0 : index
    %1 = vector.load %arg2[%c0_1, %c0_2, %c0_3] : memref<1x72x512xbf16, #tpu.memory_space<vmem>>, vector<1x72x512xbf16>
    %2 = vector.shape_cast %1 : vector<1x72x512xbf16> to vector<72x512xbf16>
    %cst = arith.constant dense<0.000000e+00> : vector<8x512xf32>
    %3 = tpu.matmul %0, %2, %cst {dimension_numbers = #tpu.dot_dimension_numbers<[1], [0], [0], [1], [0, 0, 1, 1], [], []>} : vector<8x72xbf16>, vector<72x512xbf16>, vector<8x512xf32> -> vector<8x512xf32>
    %c0_4 = arith.constant 0 : index
    %4 = memref.load %arg1[%c0_4] : memref<1xf32, #tpu.memory_space<smem>>
    %cst_5 = arith.constant 0.000000e+00 : f32
    %5 = vector.broadcast %cst_5 : f32 to vector<8x512xf32>
    %6 = arith.cmpf oge, %3, %5 : vector<8x512xf32>
    %7 = vector.broadcast %4 : f32 to vector<8x512xf32>
    %8 = arith.mulf %7, %3 : vector<8x512xf32>
    %9 = arith.select %6, %3, %8 : vector<8x512xi1>, vector<8x512xf32>
    %cst_6 = arith.constant 1.000000e+00 : f32
    %10 = vector.broadcast %cst_6 : f32 to vector<8x512xf32>
    %11 = tpu.concatenate %3, %9, %10 in 0 : vector<8x512xf32>, vector<8x512xf32>, vector<8x512xf32> -> vector<24x512xf32>
    %c0_7 = arith.constant 0 : index
    %c0_8 = arith.constant 0 : index
    %12 = vector.load %arg4[%c0_7, %c0_8] : memref<8x24xf32, #tpu.memory_space<vmem>>, vector<8x24xf32>
    %cst_9 = arith.constant dense<0.000000e+00> : vector<8x512xf32>
    %13 = tpu.matmul %12, %11, %cst_9 {dimension_numbers = #tpu.dot_dimension_numbers<[1], [0], [0], [1], [0, 0, 1, 1], [], []>} : vector<8x24xf32>, vector<24x512xf32>, vector<8x512xf32> -> vector<8x512xf32>
    %c0_10 = arith.constant 0 : index
    %c0_11 = arith.constant 0 : index
    %c0_12 = arith.constant 0 : index
    %14 = vector.load %arg5[%c0_10, %c0_11, %c0_12] : memref<1x8x512xf32, #tpu.memory_space<vmem>>, vector<1x8x512xf32>
    %15 = vector.shape_cast %14 : vector<1x8x512xf32> to vector<8x512xf32>
    %16 = vector.shape_cast %13 : vector<8x512xf32> to vector<1x8x512xf32>
    tpu.vector_store %arg5[%c0_10, %c0_11, %c0_12], %16 {strides = array<i32>} : memref<1x8x512xf32, #tpu.memory_space<vmem>>, vector<1x8x512xf32>,
    return
  }
  func.func @transform_0(%arg0: i32) -> i32 {
    %c0_i32 = arith.constant 0 : i32
    %c0_i32_0 = arith.constant 0 : i32
    return %c0_i32 : i32
  }
  func.func @transform_1(%arg0: i32) -> (i32, i32, i32) {
    %c0_i32 = arith.constant 0 : i32
    %c0_i32_0 = arith.constant 0 : i32
    %c0_i32_1 = arith.constant 0 : i32
    return %arg0, %c0_i32, %c0_i32_0 : i32, i32, i32
  }
  func.func @transform_2(%arg0: i32) -> (i32, i32) {
    %c0_i32 = arith.constant 0 : i32
    %c0_i32_0 = arith.constant 0 : i32
    %c0_i32_1 = arith.constant 0 : i32
    return %c0_i32, %c0_i32_0 : i32, i32
  }
  func.func @transform_3(%arg0: i32) -> (i32, i32) {
    %c0_i32 = arith.constant 0 : i32
    %c0_i32_0 = arith.constant 0 : i32
    %c0_i32_1 = arith.constant 0 : i32
    return %c0_i32, %c0_i32_0 : i32, i32
  }
  func.func @transform_4(%arg0: i32) -> (i32, i32, i32) {
    %c0_i32 = arith.constant 0 : i32
    %c0_i32_0 = arith.constant 0 : i32
    %c0_i32_1 = arith.constant 0 : i32
    return %arg0, %c0_i32, %c0_i32_0 : i32, i32, i32
  }
}

</mosaic_0001>

<bundles_post_ra>
// kernel: tpu_custom_call.1
= control target key start
LH: loop header
LB: loop body
LE: loop exit
PB: predicated region body
PF: predicated region fallthrough
CT: control target
= control target key end

     0   :  { %10 = vsyncpa [#allocation4], 0  ;;  %s614_s0 = inlined_call_operand.<no memory space> [shape: f32[1], index: 0, kind: input, shape index: {}]   ;;  %s615_s1 = inlined_call_operand.hbm [shape: bf16[1,72,512], index: 1, kind: input, shape index: {}]   ;;  %s616_s2 = inlined_call_operand.hbm [shape: bf16[8,72], index: 2, kind: input, shape index: {}]   ;;  %s617_s3 = inlined_call_operand.hbm [shape: f32[8,24], index: 3, kind: input, shape index: {}]   ;;  %s618_s4 = inlined_call_operand.hbm [shape: f32[1,8,512], index: 4, kind: output, shape index: {}]  }
   0x1   :  { %11 = vsyncpa [#allocation7], 0  ;;  %s33_s17 = sshll.u32 %s616_s2, 4  ;;  %s34_s17 = int_to_ptr.hbm [resolvable:$true] %s33_s17 }
   0x2   :  { %12 = vsyncpa [#allocation5], 0  ;;  %s559_s18 = smov [#allocation6]   ;;  %s19_s22 = sshll.u32 %s615_s1, 4  ;;  %s20_s22 = int_to_ptr.hbm [resolvable:$true] %s19_s22 }
   0x3   :  { %s35_s19 = sshll.u32 %s559_s18, 4  ;;  %s560_s23 = smov [#allocation3]   ;;  %s36_s19 = int_to_ptr.vmem [resolvable:$true] %s35_s19 }
   0x4   :  { %38 = dma.hbm_to_vmem [thread:$0]  %s34_s17, 64, %s36_s19, [#allocation7]  }
   0x5   :  { %s21_s24 = sshll.u32 %s560_s23, 4  ;;  %s561_s25 = smov 256   ;;  %s22_s24 = int_to_ptr.vmem [resolvable:$true] %s21_s24 }
   0x6   :  { %s562_s26 = smov 16   ;;  %s44_s2 = sshll.u32 %s617_s3, 4  ;;  %s45_s2 = int_to_ptr.hbm [resolvable:$true] %s44_s2 }
   0x7   :  { %27 = dma.hbm_to_vmem [thread:$0]  %s20_s22, 2304, %s22_s24, [#allocation4], %s561_s25, %s561_s25, %s562_s26  }
   0x8   :  { %s563_s29 = smov [#allocation8]  }
   0x9   :  { %s46_s30 = sshll.u32 %s563_s29, 4  ;;  %s47_s30 = int_to_ptr.vmem [resolvable:$true] %s46_s30 }
   0xa   :  { %49 = dma.hbm_to_vmem [thread:$0]  %s45_s2, 128, %s47_s30, [#allocation7]  }
   0xb   :  { %553 = dma.done.wait [#allocation4], 2304  }
   0xc   :  { %554 = vsyncadd [#allocation4], 4294964992 }
   0xd   :  { %555 = dma.done.wait [#allocation7], 192  }
   0xe   :  { %556 = vsyncadd [#allocation7], 4294967104  ;;  %v81_v0 = vld [vmem:[#allocation3 + $0x88] sm:$0xff]  ;;  %v80_v1 = vld [vmem:[#allocation3 + $0x80] sm:$0xff]  ;;  %vm176_vm0 = vcmask 1043456   ;;  %vm172_vm1 = vcmask 588800  }
   0xf   :  { %v134_v2 = vunpack.c.l.b16 %v81_v0  ;;  %v135_v3 = vunpack.c.h.b16 %v81_v0  ;;  %v132_v4 = vunpack.c.l.b16 %v80_v1  ;;  %v133_v5 = vunpack.c.h.b16 %v80_v1  ;;  %v420_v6 = vld [vmem:[#allocation3 + $0x68] sm:$0xf]  ;;  %v449_v7 = vld [vmem:[#allocation3 + $0x74] sm:$0xf0]  ;;  %v447_v12 = vld [vmem:[#allocation3 + $0x6c] sm:$0xf] }
  0x10   :  { %v422_v13 = vld [vmem:[#allocation3 + $0x78] sm:$0xf0]  ;;  %v412_v14 = vld [vmem:[#allocation3 + $0x60] sm:$0xf]  ;;  %v448_v15 = vld [vmem:[#allocation3 + $0x6c] sm:$0xf0]  ;;  %v421_v22 = vor.u32 %v449_v7, %v420_v6  ;;  %v246_v0 = vstv %s614_s0 }
  0x11   :  { %v154_v8 = vpack.c.b16 %v134_v2, %v134_v2  ;;  %v155_v9 = vpack.c.b16 %v135_v3, %v135_v3  ;;  %v152_v10 = vpack.c.b16 %v132_v4, %v132_v4  ;;  %v153_v11 = vpack.c.b16 %v133_v5, %v133_v5  ;;  %v446_v16 = vld [vmem:[#allocation3 + $0x64] sm:$0xf]  ;;  %v414_v17 = vld [vmem:[#allocation3 + $0x70] sm:$0xf0]  ;;  %v404_v24 = vld [vmem:[#allocation3 + $0x48] sm:$0xf] }
  0x12   :  { %v425_v23 = vor.u32 %v447_v12, %v422_v13  ;;  %v445_v25 = vld [vmem:[#allocation3 + $0x54] sm:$0xf0]  ;;  %v413_v26 = vor.u32 %v448_v15, %v412_v14  ;;  %v417_v27 = vor.u32 %v446_v16, %v414_v17  ;;  %v443_v28 = vld [vmem:[#allocation3 + $0x4c] sm:$0xf]  ;;  %v406_v29 = vld [vmem:[#allocation3 + $0x58] sm:$0xf0] }
  0x13   :  { %v184_v18 = vsel %vm176_vm0, %v154_v8, 0  ;;  %v187_v19 = vsel %vm176_vm0, %v155_v9, 0  ;;  %v178_v20 = vsel %vm176_vm0, %v152_v10, 0  ;;  %v181_v21 = vsel %vm176_vm0, %v153_v11, 0  ;;  %v396_v30 = vld [vmem:[#allocation3 + $0x40] sm:$0xf] }
  0x14   :  { %218 = vmatpush.bf16.msra.mxu2 %v184_v18  ;;  %231 = vmatpush.bf16.msra.mxu3 %v187_v19  ;;  %v444_v31 = vld [vmem:[#allocation3 + $0x4c] sm:$0xf0]  ;;  %v442_v32 = vld [vmem:[#allocation3 + $0x44] sm:$0xf]  ;;  %v398_v33 = vld [vmem:[#allocation3 + $0x50] sm:$0xf0]  ;;  %v405_v34 = vor.u32 %v445_v25, %v404_v24  ;;  %v409_v35 = vor.u32 %v443_v28, %v406_v29 }
  0x15   :  { %192 = vmatpush.bf16.msra.mxu0 %v178_v20  ;;  %205 = vmatpush.bf16.msra.mxu1 %v181_v21  ;;  %v388_v36 = vld [vmem:[#allocation3 + $0x28] sm:$0xf]  ;;  %v441_v37 = vld [vmem:[#allocation3 + $0x34] sm:$0xf0]  ;;  %v397_v38 = vor.u32 %v444_v31, %v396_v30  ;;  %v401_v39 = vor.u32 %v442_v32, %v398_v33  ;;  %v439_v40 = vld [vmem:[#allocation3 + $0x2c] sm:$0xf] }
  0x16   :  { %v390_v41 = vld [vmem:[#allocation3 + $0x38] sm:$0xf0]  ;;  %v380_v42 = vld [vmem:[#allocation3 + $0x20] sm:$0xf]  ;;  %v440_v43 = vld [vmem:[#allocation3 + $0x2c] sm:$0xf0]  ;;  %v389_v46 = vor.u32 %v441_v37, %v388_v36 }
  0x17   :  { %v438_v44 = vld [vmem:[#allocation3 + $0x24] sm:$0xf]  ;;  %v382_v45 = vld [vmem:[#allocation3 + $0x30] sm:$0xf0]  ;;  %v393_v47 = vor.u32 %v439_v40, %v390_v41  ;;  %v372_v48 = vld [vmem:[#allocation3 + $0x8] sm:$0xf]  ;;  %v381_v50 = vor.u32 %v440_v43, %v380_v42 }
  0x18   :  { %219 = vmatpush.bf16.msra.mxu2 %v421_v22  ;;  %232 = vmatpush.bf16.msra.mxu3 %v425_v23  ;;  %v437_v49 = vld [vmem:[#allocation3 + $0x14] sm:$0xf0]  ;;  %v385_v51 = vor.u32 %v438_v44, %v382_v45  ;;  %v435_v52 = vld [vmem:[#allocation3 + $0xc] sm:$0xf]  ;;  %v374_v53 = vld [vmem:[#allocation3 + $0x18] sm:$0xf0] }
  0x19   :  { %193 = vmatpush.bf16.msra.mxu0 %v413_v26  ;;  %206 = vmatpush.bf16.msra.mxu1 %v417_v27  ;;  %v364_v54 = vld [vmem:[#allocation3] sm:$0xf]  ;;  %v436_v55 = vld [vmem:[#allocation3 + $0xc] sm:$0xf0]  ;;  %v434_v56 = vld [vmem:[#allocation3 + $0x4] sm:$0xf]  ;;  %v373_v58 = vor.u32 %v437_v49, %v372_v48  ;;  %v377_v59 = vor.u32 %v435_v52, %v374_v53 }
  0x1a   :  { %v366_v57 = vld [vmem:[#allocation3 + $0x10] sm:$0xf0]  ;;  %v365_v60 = vor.u32 %v436_v55, %v364_v54  ;;  %v63_v62 = vld [vmem:[#allocation6] sm:$0xf]  ;;  %v564_v63 = vmov 1.0   ;;  %vm256_vm4 = vcmask 195584  }
  0x1b   :  { %v369_v61 = vor.u32 %v434_v56, %v366_v57  ;;  %v255_v11 = vld [vmem:[#allocation8] sm:$0xff]  ;;  %s565_s0 = smov [#allocation9]   ;;  %s351_s8 = sshll.u32 %s618_s4, 4  ;;  %s352_s8 = int_to_ptr.hbm [resolvable:$true] %s351_s8 }
  0x1c   :  { %220 = vmatpush.bf16.msra.mxu2 %v405_v34  ;;  %233 = vmatpush.bf16.msra.mxu3 %v409_v35  ;;  %s349_s5 = sshll.u32 %s565_s0, 4  ;;  %s350_s5 = int_to_ptr.vmem [resolvable:$true] %s349_s5 }
  0x1d   :  { %194 = vmatpush.bf16.msra.mxu0 %v397_v38  ;;  %207 = vmatpush.bf16.msra.mxu1 %v401_v39 }
  0x20   :  { %221 = vmatpush.bf16.msra.mxu2 %v389_v46  ;;  %234 = vmatpush.bf16.msra.mxu3 %v393_v47 }
  0x21   :  { %195 = vmatpush.bf16.msra.mxu0 %v381_v50  ;;  %208 = vmatpush.bf16.msra.mxu1 %v385_v51 }
  0x24   :  { %222 = vmatpush.bf16.msra.mxu2 %v373_v58  ;;  %235 = vmatpush.bf16.msra.mxu3 %v377_v59 }
  0x25   :  { %196 = vmatpush.bf16.msra.mxu0 %v365_v60  ;;  %209 = vmatpush.bf16.msra.mxu1 %v369_v61 }
  0x27   :  { %428 = vmatmul.msk.bf16.vlgmr.msra.gmra.mxu2 %vm172_vm1, %v63_v62  ;;  %429 = vmatmul.msk.bf16.vlgmr.msra.gmra.mxu3 %vm172_vm1, %v63_v62 }
  0x28   :  { %426 = vmatmul.msk.bf16.vlgmr.msra.gmra.mxu0 %vm172_vm1, %v63_v62  ;;  %427 = vmatmul.msk.bf16.vlgmr.msra.gmra.mxu1 %vm172_vm1, %v63_v62 }
  0x29   :  { %313 = vmatpush.msrb.mxu2 %v564_v63  ;;  %333 = vmatpush.msrb.mxu3 %v564_v63 }
  0x2a   :  { %273 = vmatpush.msrb.mxu0 %v564_v63  ;;  %293 = vmatpush.msrb.mxu1 %v564_v63 }
  0xa5   :  { %v198_v1 = vpop.f32.mrf.mxu0  ;;  %v211_v2 = vpop.f32.mrf.mxu1 }
  0xa6   :  { %vm242_vm2 = vcmp.ge.f32.partialorder %v198_v1, 0.0  ;;  %v247_v3 = vmul.f32 %v246_v0, %v198_v1  ;;  %vm243_vm3 = vcmp.ge.f32.partialorder %v211_v2, 0.0  ;;  %v248_v4 = vmul.f32 %v246_v0, %v211_v2 }
  0xa8   :  { %v251_v5 = vsel %vm242_vm2, %v198_v1, %v247_v3  ;;  %v252_v6 = vsel %vm243_vm3, %v211_v2, %v248_v4 }
  0xa9   :  { %274 = vmatpush.msrb.mxu0 %v251_v5  ;;  %294 = vmatpush.msrb.mxu1 %v252_v6 }
  0xaa   :  { %v224_v7 = vpop.f32.mrf.mxu2  ;;  %v237_v8 = vpop.f32.mrf.mxu3 }
  0xab   :  { %vm244_vm5 = vcmp.ge.f32.partialorder %v224_v7, 0.0  ;;  %v249_v9 = vmul.f32 %v246_v0, %v224_v7  ;;  %vm245_vm6 = vcmp.ge.f32.partialorder %v237_v8, 0.0  ;;  %v250_v10 = vmul.f32 %v246_v0, %v237_v8  ;;  %275 = vmatpush.msrb.mxu0 %v198_v1  ;;  %295 = vmatpush.msrb.mxu1 %v211_v2 }
  0xac   :  { %430 = vmatmul.msk.f32.vlgmr.msrb.gmra.mxu0 %vm256_vm4, %v255_v11  ;;  %431 = vmatmul.msk.f32.vlgmr.msrb.gmra.mxu1 %vm256_vm4, %v255_v11 }
  0xad   :  { %v253_v12 = vsel %vm244_vm5, %v224_v7, %v249_v9  ;;  %v254_v13 = vsel %vm245_vm6, %v237_v8, %v250_v10  ;;  %v200_v14 = vpop.f32.mrf.mxu0  ;;  %v213_v15 = vpop.f32.mrf.mxu1 }
  0xae   :  { %314 = vmatpush.msrb.mxu2 %v253_v12  ;;  %334 = vmatpush.msrb.mxu3 %v254_v13 }
  0xb0   :  { %315 = vmatpush.msrb.mxu2 %v224_v7  ;;  %335 = vmatpush.msrb.mxu3 %v237_v8 }
  0xb1   :  { %432 = vmatmul.msk.f32.vlgmr.msrb.gmra.mxu2 %vm256_vm4, %v255_v11  ;;  %433 = vmatmul.msk.f32.vlgmr.msrb.gmra.mxu3 %vm256_vm4, %v255_v11 }
  0xb2   :  { %v226_v16 = vpop.f32.mrf.mxu2  ;;  %v239_v17 = vpop.f32.mrf.mxu3 }
 0x129   :  { %v277_v18 = vpop.f32.mrf.mxu0  ;;  %v297_v19 = vpop.f32.mrf.mxu1 }
 0x12a   :  { %340 = vst [vmem:[#allocation9] sm:$0xff] %v277_v18 }
 0x12b   :  { %341 = vst [vmem:[#allocation9 + $0x8] sm:$0xff] %v297_v19 }
 0x134   :  { %v317_v20 = vpop.f32.mrf.mxu2  ;;  %v337_v21 = vpop.f32.mrf.mxu3 }
 0x135   :  { %342 = vst [vmem:[#allocation9 + $0x10] sm:$0xff] %v317_v20 }
 0x136   :  { %343 = vst [vmem:[#allocation9 + $0x18] sm:$0xff] %v337_v21 }
 0x137   :  { %354 = dma.vmem_to_hbm [thread:$0]  %s350_s5, 512, %s352_s8, [#allocation5]  }
 0x138   :  { %557 = dma.done.wait [#allocation5], 512  }
 0x139   :  { %558 = vsyncadd [#allocation5], 4294966784 }
 0x13a   :  { %359 = vsyncpa [#allocation4], 1 }
 0x13b   :  { %360 = vsyncpa [#allocation7], 1 }
 0x13c   :  { %361 = vsyncpa [#allocation5], 1 }

</bundles_post_ra>
